<compile_context>
chip_gen: v7x
topology: tpu7x:2x2x1
jax: 0.10.0
libtpu: 0.0.40
codegen_flags: <defaults>
</compile_context>

<pallas_src>
import functools
import math

import jax
import jax.numpy as jnp
from jax.experimental import pallas as pl
from jax.experimental.pallas import tpu as pltpu


def _round_up(x, m):
    return ((x + m - 1) // m) * m


def _pick_tile(dim, pref, align):
    """Full dim if small; else the largest `align`-multiple divisor <= pref."""
    if dim <= pref:
        return dim
    t = (pref // align) * align
    while t >= align:
        if dim % t == 0:
            return t
        t -= align
    return dim  # fall back to the whole dim (correct; costs VMEM for huge dims)


def _cross_mha_kernel(q_ref, k_ref, v_ref, wt_ref, o_ref,
                      m_sc, l_sc, acc_sc, *,
                      no_of_heads, head_row_stride, scale):
    """Fused multi-head cross attention + folded output projection.

    Grid: (batch, q_tiles, kv_tiles); kv innermost ("arbitrary").
      q_ref  : (tq, D)   query tile, all H heads side by side along D
      k_ref  : (tk, D)   key tile
      v_ref  : (tk, D)   value tile
      wt_ref : (D, D)    folded projection weight, pre-transposed (grid-invariant)
      o_ref  : (tq, D)   merged + projected output tile (lane-dense store)
    Scratch (f32, persist across the kv axis; R = head_row_stride >= tq):
      m_sc   : (H*R, 1)  per-head running max
      l_sc   : (H*R, 1)  per-head running softmax denominator
      acc_sc : (H*R, Dh) per-head un-normalized output accumulator
    """
    H = no_of_heads
    R = head_row_stride
    tq, D = q_ref.shape
    Dh = D // H
    kv = pl.program_id(2)

    @pl.when(kv == 0)
    def _():
        m_sc[...] = jnp.full_like(m_sc, -jnp.inf)
        l_sc[...] = jnp.zeros_like(l_sc)
        acc_sc[...] = jnp.zeros_like(acc_sc)

    for h in range(H):                       # static loop over heads
        cols = slice(h * Dh, (h + 1) * Dh)   # head's columns in q/k/v
        rows = slice(h * R, h * R + tq)      # head's rows in the scratch bufs

        # Pre-scale q (cheaper than scaling the (tq, tk) score matrix); keep
        # MXU operands in the input dtype, accumulate in f32.
        q = q_ref[:, cols] * scale
        k = k_ref[:, cols]
        v = v_ref[:, cols]

        s = jnp.einsum("qd,kd->qk", q, k,
                       preferred_element_type=jnp.float32)            # (tq, tk)

        m_prev = m_sc[rows, :]                                         # (tq, 1)
        m_new = jnp.maximum(m_prev, jnp.max(s, axis=-1, keepdims=True))
        alpha = jnp.exp(m_prev - m_new)
        p = jnp.exp(s - m_new)                                         # (tq, tk)

        l_sc[rows, :] = alpha * l_sc[rows, :] + jnp.sum(p, axis=-1, keepdims=True)
        acc_sc[rows, :] = alpha * acc_sc[rows, :] + jnp.dot(
            p.astype(v.dtype), v, preferred_element_type=jnp.float32)
        m_sc[rows, :] = m_new

    @pl.when(kv == pl.num_programs(2) - 1)
    def _():
        # Normalize each head and apply the folded projection directly:
        #   out = sum_h (acc_h / l_h) @ W_folded^T[h*Dh:(h+1)*Dh, :]
        # which produces a lane-dense (tq, D) slab without materializing the
        # concatenated per-head layout.
        out = jnp.zeros((tq, D), jnp.float32)
        for h in range(H):
            rows = slice(h * R, h * R + tq)
            wrows = slice(h * Dh, (h + 1) * Dh)
            inv_l = pl.reciprocal(l_sc[rows, :], approx=True)          # (tq, 1)
            o_h = (acc_sc[rows, :] * inv_l).astype(wt_ref.dtype)       # (tq, Dh)
            out = out + jnp.dot(o_h, wt_ref[wrows, :],
                                preferred_element_type=jnp.float32)
        o_ref[...] = out.astype(o_ref.dtype)


def cross_mha_forward(value, key, x, w_out, *, no_of_heads,
                      q_tile=256, kv_tile=512):
    """Matches CrossMHA.forward(value, key, x) in inference mode.

    value, key: (B, Sk, D);  x (the query): (B, Sq, D)
    w_out: (D, no_of_heads * D)  -- nn.Linear(H*D, D, bias=False).weight
    """
    B, Sq, D = x.shape
    _, Sk, _ = key.shape
    H = no_of_heads
    assert D % H == 0
    Dh = D // H
    scale = 1.0 / math.sqrt(Dh)

    # The H parameter-free head modules produce identical outputs, so
    #   concat([head_out] * H) @ W^T == head_out @ (sum of W's H column blocks)^T.
    # Fold once on the (tiny) weight and pre-transpose so the in-kernel
    # projection is a plain row-major dot.
    w_folded_t = jnp.transpose(w_out.reshape(D, H, D).sum(axis=1))      # (D, D)

    tq = _pick_tile(Sq, q_tile, 8)
    tk = _pick_tile(Sk, kv_tile, 8)
    R = _round_up(tq, 8)            # per-head row stride in scratch (aligned)

    kernel = functools.partial(
        _cross_mha_kernel, no_of_heads=H, head_row_stride=R, scale=scale)

    out = pl.pallas_call(
        kernel,
        out_shape=jax.ShapeDtypeStruct((B, Sq, D), x.dtype),
        grid=(B, Sq // tq, Sk // tk),
        in_specs=[
            pl.BlockSpec((pl.Squeezed(), tq, D), lambda b, j, kv: (b, j, 0)),
            pl.BlockSpec((pl.Squeezed(), tk, D), lambda b, j, kv: (b, kv, 0)),
            pl.BlockSpec((pl.Squeezed(), tk, D), lambda b, j, kv: (b, kv, 0)),
            pl.BlockSpec((D, D), lambda b, j, kv: (0, 0)),
        ],
        out_specs=pl.BlockSpec((pl.Squeezed(), tq, D), lambda b, j, kv: (b, j, 0)),
        scratch_shapes=[
            pltpu.VMEM((H * R, 1), jnp.float32),    # running max
            pltpu.VMEM((H * R, 1), jnp.float32),    # running denominator
            pltpu.VMEM((H * R, Dh), jnp.float32),   # output accumulator
        ],
        compiler_params=pltpu.CompilerParams(
            dimension_semantics=("parallel", "parallel", "arbitrary")),
    )(x, key, value, w_folded_t)
    # TODO(synk): attention/residual dropout omitted -- identity in inference
    # mode; training-mode dropout would need pltpu.prng_seed/prng_random_bits.
    return out


if __name__ == "__main__":
    # Small deterministic configuration (ModelArgs stand-in):
    #   embeddings_dims = 32, no_of_heads = 4, q_seq = 8, kv_seq = 16, batch = 2
    B, Sq, Sk = 2, 8, 16
    D, H = 32, 4

    root = jax.random.PRNGKey(0)
    kv_key, kk_key, kx_key, kw_key = jax.random.split(root, 4)
    value = jax.random.normal(kv_key, (B, Sk, D), dtype=jnp.float32)
    key_in = jax.random.normal(kk_key, (B, Sk, D), dtype=jnp.float32)
    x = jax.random.normal(kx_key, (B, Sq, D), dtype=jnp.float32)
    # nn.Linear(H*D, D, bias=False).weight -> shape (D, H*D)
    w_out = jax.random.normal(kw_key, (D, H * D), dtype=jnp.float32) / jnp.sqrt(
        float(H * D)
    )

    out = cross_mha_forward(value, key_in, x, w_out, no_of_heads=H)
    out = jax.block_until_ready(out)

    # Pure-JAX reference of the original module's forward semantics.
    def reference(value, key_, x_, w):
        Dh = D // H

        def split(t, s_len):
            return t.reshape(B, s_len, H, Dh).transpose(0, 2, 1, 3)

        q_, k_, v_ = split(x_, Sq), split(key_, Sk), split(value, Sk)
        s = jnp.einsum("bhqd,bhkd->bhqk", q_, k_) / jnp.sqrt(float(Dh))
        p = jax.nn.softmax(s, axis=-1)
        o = jnp.einsum("bhqk,bhkd->bhqd", p, v_)
        o = o.transpose(0, 2, 1, 3).reshape(B, Sq, D)
        concat = jnp.concatenate([o] * H, axis=-1)
        return concat @ w.T

    expected = reference(value, key_in, x, w_out)
    assert out.shape == (B, Sq, D)
    max_err = float(jnp.max(jnp.abs(out - expected)))
    assert jnp.allclose(out, expected, atol=1e-2, rtol=1e-2), max_err

    print("KERNEL_OK")
</pallas_src>

<mosaic_0001>
module attributes {stable_mosaic.version = 11 : i64} {
  func.func @_cross_mha_kernel(%arg0: i32, %arg1: i32, %arg2: i32, %arg3: memref<1x8x32xf32, #tpu.memory_space<vmem>>, %arg4: memref<1x16x32xf32, #tpu.memory_space<vmem>>, %arg5: memref<1x16x32xf32, #tpu.memory_space<vmem>>, %arg6: memref<32x32xf32, #tpu.memory_space<vmem>>, %arg7: memref<1x8x32xf32, #tpu.memory_space<vmem>>, %arg8: memref<32x1xf32, #tpu.memory_space<vmem>>, %arg9: memref<32x1xf32, #tpu.memory_space<vmem>>, %arg10: memref<32x8xf32, #tpu.memory_space<vmem>>) attributes {dimension_semantics = [#tpu.dimension_semantics<parallel>, #tpu.dimension_semantics<parallel>, #tpu.dimension_semantics<arbitrary>], iteration_bounds = array<i64: 2, 1, 1>, scalar_prefetch = 0 : i64, scratch_operands = 3 : i64, tpu.core_type = #tpu.core_type<tc>, window_params = [{transform_indices = @transform_0, window_bounds = array<i64: 1, 8, 32>}, {transform_indices = @transform_1, window_bounds = array<i64: 1, 16, 32>}, {transform_indices = @transform_2, window_bounds = array<i64: 1, 16, 32>}, {pipeline_mode = #tpu.pipeline_mode<synchronous>, transform_indices = @transform_3, window_bounds = array<i64: 32, 32>}, {transform_indices = @transform_4, window_bounds = array<i64: 1, 8, 32>}]} {
    %c0_i32 = arith.constant 0 : i32
    %0 = arith.cmpi eq, %arg2, %c0_i32 : i32
    %1 = arith.extui %0 : i1 to i32
    %c0_i32_0 = arith.constant 0 : i32
    %2 = arith.cmpi ne, %1, %c0_i32_0 : i32
    scf.if %2 {
      %cst_102 = arith.constant 0xFF800000 : f32
      %130 = vector.broadcast %cst_102 : f32 to vector<32x1xf32>
      %c0_103 = arith.constant 0 : index
      %c0_104 = arith.constant 0 : index
      %131 = vector.load %arg8[%c0_103, %c0_104] : memref<32x1xf32, #tpu.memory_space<vmem>>, vector<32x1xf32>
      tpu.vector_store %arg8[%c0_103, %c0_104], %130 {strides = array<i32>} : memref<32x1xf32, #tpu.memory_space<vmem>>, vector<32x1xf32>,
      %cst_105 = arith.constant 0.000000e+00 : f32
      %132 = vector.broadcast %cst_105 : f32 to vector<32x1xf32>
      %c0_106 = arith.constant 0 : index
      %c0_107 = arith.constant 0 : index
      %133 = vector.load %arg9[%c0_106, %c0_107] : memref<32x1xf32, #tpu.memory_space<vmem>>, vector<32x1xf32>
      tpu.vector_store %arg9[%c0_106, %c0_107], %132 {strides = array<i32>} : memref<32x1xf32, #tpu.memory_space<vmem>>, vector<32x1xf32>,
      %cst_108 = arith.constant 0.000000e+00 : f32
      %134 = vector.broadcast %cst_108 : f32 to vector<32x8xf32>
      %c0_109 = arith.constant 0 : index
      %c0_110 = arith.constant 0 : index
      %135 = vector.load %arg10[%c0_109, %c0_110] : memref<32x8xf32, #tpu.memory_space<vmem>>, vector<32x8xf32>
      tpu.vector_store %arg10[%c0_109, %c0_110], %134 {strides = array<i32>} : memref<32x8xf32, #tpu.memory_space<vmem>>, vector<32x8xf32>,
    } else {
    }
    %c0 = arith.constant 0 : index
    %c0_1 = arith.constant 0 : index
    %c0_2 = arith.constant 0 : index
    %3 = vector.load %arg3[%c0, %c0_1, %c0_2] : memref<1x8x32xf32, #tpu.memory_space<vmem>>, vector<1x8x8xf32>
    %4 = vector.shape_cast %3 : vector<1x8x8xf32> to vector<8x8xf32>
    %cst = arith.constant 0.353553385 : f32
    %5 = vector.broadcast %cst : f32 to vector<8x8xf32>
    %6 = arith.mulf %4, %5 : vector<8x8xf32>
    %c0_3 = arith.constant 0 : index
    %c0_4 = arith.constant 0 : index
    %c0_5 = arith.constant 0 : index
    %7 = vector.load %arg4[%c0_3, %c0_4, %c0_5] : memref<1x16x32xf32, #tpu.memory_space<vmem>>, vector<1x16x8xf32>
    %8 = vector.shape_cast %7 : vector<1x16x8xf32> to vector<16x8xf32>
    %c0_6 = arith.constant 0 : index
    %c0_7 = arith.constant 0 : index
    %c0_8 = arith.constant 0 : index
    %9 = vector.load %arg5[%c0_6, %c0_7, %c0_8] : memref<1x16x32xf32, #tpu.memory_space<vmem>>, vector<1x16x8xf32>
    %10 = vector.shape_cast %9 : vector<1x16x8xf32> to vector<16x8xf32>
    "tpu.trace_start"() <{level = 10 : i32, message = "qd,kd->qk"}> : () -> ()
    %cst_9 = arith.constant dense<0.000000e+00> : vector<8x16xf32>
    %11 = tpu.matmul %6, %8, %cst_9 {dimension_numbers = #tpu.dot_dimension_numbers<[1], [1], [0], [0], [0, 0, 1, 0], [], []>} : vector<8x8xf32>, vector<16x8xf32>, vector<8x16xf32> -> vector<8x16xf32>
    "tpu.trace_stop"() : () -> ()
    %c0_10 = arith.constant 0 : index
    %c0_11 = arith.constant 0 : index
    %12 = vector.load %arg8[%c0_10, %c0_11] : memref<32x1xf32, #tpu.memory_space<vmem>>, vector<8x1xf32>
    %cst_12 = arith.constant dense<0xFF800000> : vector<8xf32>
    %13 = vector.multi_reduction <maximumf>, %11, %cst_12 [1] : vector<8x16xf32> to vector<8xf32>
    %14 = vector.shape_cast %13 : vector<8xf32> to vector<8x1xf32>
    %15 = arith.maximumf %12, %14 : vector<8x1xf32>
    %16 = arith.subf %12, %15 : vector<8x1xf32>
    %17 = math.exp %16 : vector<8x1xf32>
    %18 = vector.broadcast %15 : vector<8x1xf32> to vector<8x16xf32>
    %19 = arith.subf %11, %18 : vector<8x16xf32>
    %20 = math.exp %19 : vector<8x16xf32>
    %c0_13 = arith.constant 0 : index
    %c0_14 = arith.constant 0 : index
    %21 = vector.load %arg9[%c0_13, %c0_14] : memref<32x1xf32, #tpu.memory_space<vmem>>, vector<8x1xf32>
    %22 = arith.mulf %17, %21 : vector<8x1xf32>
    %cst_15 = arith.constant dense<0.000000e+00> : vector<8xf32>
    %23 = vector.multi_reduction <add>, %20, %cst_15 [1] : vector<8x16xf32> to vector<8xf32>
    %24 = vector.shape_cast %23 : vector<8xf32> to vector<8x1xf32>
    %25 = arith.addf %22, %24 : vector<8x1xf32>
    %c0_16 = arith.constant 0 : index
    %c0_17 = arith.constant 0 : index
    %26 = vector.load %arg9[%c0_16, %c0_17] : memref<32x1xf32, #tpu.memory_space<vmem>>, vector<8x1xf32>
    tpu.vector_store %arg9[%c0_16, %c0_17], %25 {strides = array<i32>} : memref<32x1xf32, #tpu.memory_space<vmem>>, vector<8x1xf32>,
    %c0_18 = arith.constant 0 : index
    %c0_19 = arith.constant 0 : index
    %27 = vector.load %arg10[%c0_18, %c0_19] : memref<32x8xf32, #tpu.memory_space<vmem>>, vector<8x8xf32>
    %28 = vector.broadcast %17 : vector<8x1xf32> to vector<8x8xf32>
    %29 = arith.mulf %28, %27 : vector<8x8xf32>
    %cst_20 = arith.constant dense<0.000000e+00> : vector<8x8xf32>
    %30 = tpu.matmul %20, %10, %cst_20 {dimension_numbers = #tpu.dot_dimension_numbers<[1], [0], [0], [1], [0, 0, 1, 1], [], []>} : vector<8x16xf32>, vector<16x8xf32>, vector<8x8xf32> -> vector<8x8xf32>
    %31 = arith.addf %29, %30 : vector<8x8xf32>
    %c0_21 = arith.constant 0 : index
    %c0_22 = arith.constant 0 : index
    %32 = vector.load %arg10[%c0_21, %c0_22] : memref<32x8xf32, #tpu.memory_space<vmem>>, vector<8x8xf32>
    tpu.vector_store %arg10[%c0_21, %c0_22], %31 {strides = array<i32>} : memref<32x8xf32, #tpu.memory_space<vmem>>, vector<8x8xf32>,
    %c0_23 = arith.constant 0 : index
    %c0_24 = arith.constant 0 : index
    %33 = vector.load %arg8[%c0_23, %c0_24] : memref<32x1xf32, #tpu.memory_space<vmem>>, vector<8x1xf32>
    tpu.vector_store %arg8[%c0_23, %c0_24], %15 {strides = array<i32>} : memref<32x1xf32, #tpu.memory_space<vmem>>, vector<8x1xf32>,
    %c0_25 = arith.constant 0 : index
    %c0_26 = arith.constant 0 : index
    %c8 = arith.constant 8 : index
    %34 = vector.load %arg3[%c0_25, %c0_26, %c8] : memref<1x8x32xf32, #tpu.memory_space<vmem>>, vector<1x8x8xf32>
    %35 = vector.shape_cast %34 : vector<1x8x8xf32> to vector<8x8xf32>
    %cst_27 = arith.constant 0.353553385 : f32
    %36 = vector.broadcast %cst_27 : f32 to vector<8x8xf32>
    %37 = arith.mulf %35, %36 : vector<8x8xf32>
    %c0_28 = arith.constant 0 : index
    %c0_29 = arith.constant 0 : index
    %c8_30 = arith.constant 8 : index
    %38 = vector.load %arg4[%c0_28, %c0_29, %c8_30] : memref<1x16x32xf32, #tpu.memory_space<vmem>>, vector<1x16x8xf32>
    %39 = vector.shape_cast %38 : vector<1x16x8xf32> to vector<16x8xf32>
    %c0_31 = arith.constant 0 : index
    %c0_32 = arith.constant 0 : index
    %c8_33 = arith.constant 8 : index
    %40 = vector.load %arg5[%c0_31, %c0_32, %c8_33] : memref<1x16x32xf32, #tpu.memory_space<vmem>>, vector<1x16x8xf32>
    %41 = vector.shape_cast %40 : vector<1x16x8xf32> to vector<16x8xf32>
    "tpu.trace_start"() <{level = 10 : i32, message = "qd,kd->qk"}> : () -> ()
    %cst_34 = arith.constant dense<0.000000e+00> : vector<8x16xf32>
    %42 = tpu.matmul %37, %39, %cst_34 {dimension_numbers = #tpu.dot_dimension_numbers<[1], [1], [0], [0], [0, 0, 1, 0], [], []>} : vector<8x8xf32>, vector<16x8xf32>, vector<8x16xf32> -> vector<8x16xf32>
    "tpu.trace_stop"() : () -> ()
    %c8_35 = arith.constant 8 : index
    %c0_36 = arith.constant 0 : index
    %43 = vector.load %arg8[%c8_35, %c0_36] : memref<32x1xf32, #tpu.memory_space<vmem>>, vector<8x1xf32>
    %cst_37 = arith.constant dense<0xFF800000> : vector<8xf32>
    %44 = vector.multi_reduction <maximumf>, %42, %cst_37 [1] : vector<8x16xf32> to vector<8xf32>
    %45 = vector.shape_cast %44 : vector<8xf32> to vector<8x1xf32>
    %46 = arith.maximumf %43, %45 : vector<8x1xf32>
    %47 = arith.subf %43, %46 : vector<8x1xf32>
    %48 = math.exp %47 : vector<8x1xf32>
    %49 = vector.broadcast %46 : vector<8x1xf32> to vector<8x16xf32>
    %50 = arith.subf %42, %49 : vector<8x16xf32>
    %51 = math.exp %50 : vector<8x16xf32>
    %c8_38 = arith.constant 8 : index
    %c0_39 = arith.constant 0 : index
    %52 = vector.load %arg9[%c8_38, %c0_39] : memref<32x1xf32, #tpu.memory_space<vmem>>, vector<8x1xf32>
    %53 = arith.mulf %48, %52 : vector<8x1xf32>
    %cst_40 = arith.constant dense<0.000000e+00> : vector<8xf32>
    %54 = vector.multi_reduction <add>, %51, %cst_40 [1] : vector<8x16xf32> to vector<8xf32>
    %55 = vector.shape_cast %54 : vector<8xf32> to vector<8x1xf32>
    %56 = arith.addf %53, %55 : vector<8x1xf32>
    %c8_41 = arith.constant 8 : index
    %c0_42 = arith.constant 0 : index
    %57 = vector.load %arg9[%c8_41, %c0_42] : memref<32x1xf32, #tpu.memory_space<vmem>>, vector<8x1xf32>
    tpu.vector_store %arg9[%c8_41, %c0_42], %56 {strides = array<i32>} : memref<32x1xf32, #tpu.memory_space<vmem>>, vector<8x1xf32>,
    %c8_43 = arith.constant 8 : index
    %c0_44 = arith.constant 0 : index
    %58 = vector.load %arg10[%c8_43, %c0_44] : memref<32x8xf32, #tpu.memory_space<vmem>>, vector<8x8xf32>
    %59 = vector.broadcast %48 : vector<8x1xf32> to vector<8x8xf32>
    %60 = arith.mulf %59, %58 : vector<8x8xf32>
    %cst_45 = arith.constant dense<0.000000e+00> : vector<8x8xf32>
    %61 = tpu.matmul %51, %41, %cst_45 {dimension_numbers = #tpu.dot_dimension_numbers<[1], [0], [0], [1], [0, 0, 1, 1], [], []>} : vector<8x16xf32>, vector<16x8xf32>, vector<8x8xf32> -> vector<8x8xf32>
    %62 = arith.addf %60, %61 : vector<8x8xf32>
    %c8_46 = arith.constant 8 : index
    %c0_47 = arith.constant 0 : index
    %63 = vector.load %arg10[%c8_46, %c0_47] : memref<32x8xf32, #tpu.memory_space<vmem>>, vector<8x8xf32>
    tpu.vector_store %arg10[%c8_46, %c0_47], %62 {strides = array<i32>} : memref<32x8xf32, #tpu.memory_space<vmem>>, vector<8x8xf32>,
    %c8_48 = arith.constant 8 : index
    %c0_49 = arith.constant 0 : index
    %64 = vector.load %arg8[%c8_48, %c0_49] : memref<32x1xf32, #tpu.memory_space<vmem>>, vector<8x1xf32>
    tpu.vector_store %arg8[%c8_48, %c0_49], %46 {strides = array<i32>} : memref<32x1xf32, #tpu.memory_space<vmem>>, vector<8x1xf32>,
    %c0_50 = arith.constant 0 : index
    %c0_51 = arith.constant 0 : index
    %c16 = arith.constant 16 : index
    %65 = vector.load %arg3[%c0_50, %c0_51, %c16] : memref<1x8x32xf32, #tpu.memory_space<vmem>>, vector<1x8x8xf32>
    %66 = vector.shape_cast %65 : vector<1x8x8xf32> to vector<8x8xf32>
    %cst_52 = arith.constant 0.353553385 : f32
    %67 = vector.broadcast %cst_52 : f32 to vector<8x8xf32>
    %68 = arith.mulf %66, %67 : vector<8x8xf32>
    %c0_53 = arith.constant 0 : index
    %c0_54 = arith.constant 0 : index
    %c16_55 = arith.constant 16 : index
    %69 = vector.load %arg4[%c0_53, %c0_54, %c16_55] : memref<1x16x32xf32, #tpu.memory_space<vmem>>, vector<1x16x8xf32>
    %70 = vector.shape_cast %69 : vector<1x16x8xf32> to vector<16x8xf32>
    %c0_56 = arith.constant 0 : index
    %c0_57 = arith.constant 0 : index
    %c16_58 = arith.constant 16 : index
    %71 = vector.load %arg5[%c0_56, %c0_57, %c16_58] : memref<1x16x32xf32, #tpu.memory_space<vmem>>, vector<1x16x8xf32>
    %72 = vector.shape_cast %71 : vector<1x16x8xf32> to vector<16x8xf32>
    "tpu.trace_start"() <{level = 10 : i32, message = "qd,kd->qk"}> : () -> ()
    %cst_59 = arith.constant dense<0.000000e+00> : vector<8x16xf32>
    %73 = tpu.matmul %68, %70, %cst_59 {dimension_numbers = #tpu.dot_dimension_numbers<[1], [1], [0], [0], [0, 0, 1, 0], [], []>} : vector<8x8xf32>, vector<16x8xf32>, vector<8x16xf32> -> vector<8x16xf32>
    "tpu.trace_stop"() : () -> ()
    %c16_60 = arith.constant 16 : index
    %c0_61 = arith.constant 0 : index
    %74 = vector.load %arg8[%c16_60, %c0_61] : memref<32x1xf32, #tpu.memory_space<vmem>>, vector<8x1xf32>
    %cst_62 = arith.constant dense<0xFF800000> : vector<8xf32>
    %75 = vector.multi_reduction <maximumf>, %73, %cst_62 [1] : vector<8x16xf32> to vector<8xf32>
    %76 = vector.shape_cast %75 : vector<8xf32> to vector<8x1xf32>
    %77 = arith.maximumf %74, %76 : vector<8x1xf32>
    %78 = arith.subf %74, %77 : vector<8x1xf32>
    %79 = math.exp %78 : vector<8x1xf32>
    %80 = vector.broadcast %77 : vector<8x1xf32> to vector<8x16xf32>
    %81 = arith.subf %73, %80 : vector<8x16xf32>
    %82 = math.exp %81 : vector<8x16xf32>
    %c16_63 = arith.constant 16 : index
    %c0_64 = arith.constant 0 : index
    %83 = vector.load %arg9[%c16_63, %c0_64] : memref<32x1xf32, #tpu.memory_space<vmem>>, vector<8x1xf32>
    %84 = arith.mulf %79, %83 : vector<8x1xf32>
    %cst_65 = arith.constant dense<0.000000e+00> : vector<8xf32>
    %85 = vector.multi_reduction <add>, %82, %cst_65 [1] : vector<8x16xf32> to vector<8xf32>
    %86 = vector.shape_cast %85 : vector<8xf32> to vector<8x1xf32>
    %87 = arith.addf %84, %86 : vector<8x1xf32>
    %c16_66 = arith.constant 16 : index
    %c0_67 = arith.constant 0 : index
    %88 = vector.load %arg9[%c16_66, %c0_67] : memref<32x1xf32, #tpu.memory_space<vmem>>, vector<8x1xf32>
    tpu.vector_store %arg9[%c16_66, %c0_67], %87 {strides = array<i32>} : memref<32x1xf32, #tpu.memory_space<vmem>>, vector<8x1xf32>,
    %c16_68 = arith.constant 16 : index
    %c0_69 = arith.constant 0 : index
    %89 = vector.load %arg10[%c16_68, %c0_69] : memref<32x8xf32, #tpu.memory_space<vmem>>, vector<8x8xf32>
    %90 = vector.broadcast %79 : vector<8x1xf32> to vector<8x8xf32>
    %91 = arith.mulf %90, %89 : vector<8x8xf32>
    %cst_70 = arith.constant dense<0.000000e+00> : vector<8x8xf32>
    %92 = tpu.matmul %82, %72, %cst_70 {dimension_numbers = #tpu.dot_dimension_numbers<[1], [0], [0], [1], [0, 0, 1, 1], [], []>} : vector<8x16xf32>, vector<16x8xf32>, vector<8x8xf32> -> vector<8x8xf32>
    %93 = arith.addf %91, %92 : vector<8x8xf32>
    %c16_71 = arith.constant 16 : index
    %c0_72 = arith.constant 0 : index
    %94 = vector.load %arg10[%c16_71, %c0_72] : memref<32x8xf32, #tpu.memory_space<vmem>>, vector<8x8xf32>
    tpu.vector_store %arg10[%c16_71, %c0_72], %93 {strides = array<i32>} : memref<32x8xf32, #tpu.memory_space<vmem>>, vector<8x8xf32>,
    %c16_73 = arith.constant 16 : index
    %c0_74 = arith.constant 0 : index
    %95 = vector.load %arg8[%c16_73, %c0_74] : memref<32x1xf32, #tpu.memory_space<vmem>>, vector<8x1xf32>
    tpu.vector_store %arg8[%c16_73, %c0_74], %77 {strides = array<i32>} : memref<32x1xf32, #tpu.memory_space<vmem>>, vector<8x1xf32>,
    %c0_75 = arith.constant 0 : index
    %c0_76 = arith.constant 0 : index
    %c24 = arith.constant 24 : index
    %96 = vector.load %arg3[%c0_75, %c0_76, %c24] : memref<1x8x32xf32, #tpu.memory_space<vmem>>, vector<1x8x8xf32>
    %97 = vector.shape_cast %96 : vector<1x8x8xf32> to vector<8x8xf32>
    %cst_77 = arith.constant 0.353553385 : f32
    %98 = vector.broadcast %cst_77 : f32 to vector<8x8xf32>
    %99 = arith.mulf %97, %98 : vector<8x8xf32>
    %c0_78 = arith.constant 0 : index
    %c0_79 = arith.constant 0 : index
    %c24_80 = arith.constant 24 : index
    %100 = vector.load %arg4[%c0_78, %c0_79, %c24_80] : memref<1x16x32xf32, #tpu.memory_space<vmem>>, vector<1x16x8xf32>
    %101 = vector.shape_cast %100 : vector<1x16x8xf32> to vector<16x8xf32>
    %c0_81 = arith.constant 0 : index
    %c0_82 = arith.constant 0 : index
    %c24_83 = arith.constant 24 : index
    %102 = vector.load %arg5[%c0_81, %c0_82, %c24_83] : memref<1x16x32xf32, #tpu.memory_space<vmem>>, vector<1x16x8xf32>
    %103 = vector.shape_cast %102 : vector<1x16x8xf32> to vector<16x8xf32>
    "tpu.trace_start"() <{level = 10 : i32, message = "qd,kd->qk"}> : () -> ()
    %cst_84 = arith.constant dense<0.000000e+00> : vector<8x16xf32>
    %104 = tpu.matmul %99, %101, %cst_84 {dimension_numbers = #tpu.dot_dimension_numbers<[1], [1], [0], [0], [0, 0, 1, 0], [], []>} : vector<8x8xf32>, vector<16x8xf32>, vector<8x16xf32> -> vector<8x16xf32>
    "tpu.trace_stop"() : () -> ()
    %c24_85 = arith.constant 24 : index
    %c0_86 = arith.constant 0 : index
    %105 = vector.load %arg8[%c24_85, %c0_86] : memref<32x1xf32, #tpu.memory_space<vmem>>, vector<8x1xf32>
    %cst_87 = arith.constant dense<0xFF800000> : vector<8xf32>
    %106 = vector.multi_reduction <maximumf>, %104, %cst_87 [1] : vector<8x16xf32> to vector<8xf32>
    %107 = vector.shape_cast %106 : vector<8xf32> to vector<8x1xf32>
    %108 = arith.maximumf %105, %107 : vector<8x1xf32>
    %109 = arith.subf %105, %108 : vector<8x1xf32>
    %110 = math.exp %109 : vector<8x1xf32>
    %111 = vector.broadcast %108 : vector<8x1xf32> to vector<8x16xf32>
    %112 = arith.subf %104, %111 : vector<8x16xf32>
    %113 = math.exp %112 : vector<8x16xf32>
    %c24_88 = arith.constant 24 : index
    %c0_89 = arith.constant 0 : index
    %114 = vector.load %arg9[%c24_88, %c0_89] : memref<32x1xf32, #tpu.memory_space<vmem>>, vector<8x1xf32>
    %115 = arith.mulf %110, %114 : vector<8x1xf32>
    %cst_90 = arith.constant dense<0.000000e+00> : vector<8xf32>
    %116 = vector.multi_reduction <add>, %113, %cst_90 [1] : vector<8x16xf32> to vector<8xf32>
    %117 = vector.shape_cast %116 : vector<8xf32> to vector<8x1xf32>
    %118 = arith.addf %115, %117 : vector<8x1xf32>
    %c24_91 = arith.constant 24 : index
    %c0_92 = arith.constant 0 : index
    %119 = vector.load %arg9[%c24_91, %c0_92] : memref<32x1xf32, #tpu.memory_space<vmem>>, vector<8x1xf32>
    tpu.vector_store %arg9[%c24_91, %c0_92], %118 {strides = array<i32>} : memref<32x1xf32, #tpu.memory_space<vmem>>, vector<8x1xf32>,
    %c24_93 = arith.constant 24 : index
    %c0_94 = arith.constant 0 : index
    %120 = vector.load %arg10[%c24_93, %c0_94] : memref<32x8xf32, #tpu.memory_space<vmem>>, vector<8x8xf32>
    %121 = vector.broadcast %110 : vector<8x1xf32> to vector<8x8xf32>
    %122 = arith.mulf %121, %120 : vector<8x8xf32>
    %cst_95 = arith.constant dense<0.000000e+00> : vector<8x8xf32>
    %123 = tpu.matmul %113, %103, %cst_95 {dimension_numbers = #tpu.dot_dimension_numbers<[1], [0], [0], [1], [0, 0, 1, 1], [], []>} : vector<8x16xf32>, vector<16x8xf32>, vector<8x8xf32> -> vector<8x8xf32>
    %124 = arith.addf %122, %123 : vector<8x8xf32>
    %c24_96 = arith.constant 24 : index
    %c0_97 = arith.constant 0 : index
    %125 = vector.load %arg10[%c24_96, %c0_97] : memref<32x8xf32, #tpu.memory_space<vmem>>, vector<8x8xf32>
    tpu.vector_store %arg10[%c24_96, %c0_97], %124 {strides = array<i32>} : memref<32x8xf32, #tpu.memory_space<vmem>>, vector<8x8xf32>,
    %c24_98 = arith.constant 24 : index
    %c0_99 = arith.constant 0 : index
    %126 = vector.load %arg8[%c24_98, %c0_99] : memref<32x1xf32, #tpu.memory_space<vmem>>, vector<8x1xf32>
    tpu.vector_store %arg8[%c24_98, %c0_99], %108 {strides = array<i32>} : memref<32x1xf32, #tpu.memory_space<vmem>>, vector<8x1xf32>,
    %c0_i32_100 = arith.constant 0 : i32
    %127 = arith.cmpi eq, %arg2, %c0_i32_100 : i32
    %128 = arith.extui %127 : i1 to i32
    %c0_i32_101 = arith.constant 0 : i32
    %129 = arith.cmpi ne, %128, %c0_i32_101 : i32
    scf.if %129 {
      %cst_102 = arith.constant 0.000000e+00 : f32
      %130 = vector.broadcast %cst_102 : f32 to vector<8x32xf32>
      %c0_103 = arith.constant 0 : index
      %c0_104 = arith.constant 0 : index
      %131 = vector.load %arg9[%c0_103, %c0_104] : memref<32x1xf32, #tpu.memory_space<vmem>>, vector<8x1xf32>
      %132 = tpu.reciprocal %131 {approx = true} : vector<8x1xf32> -> vector<8x1xf32>
      %c0_105 = arith.constant 0 : index
      %c0_106 = arith.constant 0 : index
      %133 = vector.load %arg10[%c0_105, %c0_106] : memref<32x8xf32, #tpu.memory_space<vmem>>, vector<8x8xf32>
      %134 = vector.broadcast %132 : vector<8x1xf32> to vector<8x8xf32>
      %135 = arith.mulf %133, %134 : vector<8x8xf32>
      %c0_107 = arith.constant 0 : index
      %c0_108 = arith.constant 0 : index
      %136 = vector.load %arg6[%c0_107, %c0_108] : memref<32x32xf32, #tpu.memory_space<vmem>>, vector<8x32xf32>
      %cst_109 = arith.constant dense<0.000000e+00> : vector<8x32xf32>
      %137 = tpu.matmul %135, %136, %cst_109 {dimension_numbers = #tpu.dot_dimension_numbers<[1], [0], [0], [1], [0, 0, 1, 1], [], []>} : vector<8x8xf32>, vector<8x32xf32>, vector<8x32xf32> -> vector<8x32xf32>
      %138 = arith.addf %130, %137 : vector<8x32xf32>
      %c8_110 = arith.constant 8 : index
      %c0_111 = arith.constant 0 : index
      %139 = vector.load %arg9[%c8_110, %c0_111] : memref<32x1xf32, #tpu.memory_space<vmem>>, vector<8x1xf32>
      %140 = tpu.reciprocal %139 {approx = true} : vector<8x1xf32> -> vector<8x1xf32>
      %c8_112 = arith.constant 8 : index
      %c0_113 = arith.constant 0 : index
      %141 = vector.load %arg10[%c8_112, %c0_113] : memref<32x8xf32, #tpu.memory_space<vmem>>, vector<8x8xf32>
      %142 = vector.broadcast %140 : vector<8x1xf32> to vector<8x8xf32>
      %143 = arith.mulf %141, %142 : vector<8x8xf32>
      %c8_114 = arith.constant 8 : index
      %c0_115 = arith.constant 0 : index
      %144 = vector.load %arg6[%c8_114, %c0_115] : memref<32x32xf32, #tpu.memory_space<vmem>>, vector<8x32xf32>
      %cst_116 = arith.constant dense<0.000000e+00> : vector<8x32xf32>
      %145 = tpu.matmul %143, %144, %cst_116 {dimension_numbers = #tpu.dot_dimension_numbers<[1], [0], [0], [1], [0, 0, 1, 1], [], []>} : vector<8x8xf32>, vector<8x32xf32>, vector<8x32xf32> -> vector<8x32xf32>
      %146 = arith.addf %138, %145 : vector<8x32xf32>
      %c16_117 = arith.constant 16 : index
      %c0_118 = arith.constant 0 : index
      %147 = vector.load %arg9[%c16_117, %c0_118] : memref<32x1xf32, #tpu.memory_space<vmem>>, vector<8x1xf32>
      %148 = tpu.reciprocal %147 {approx = true} : vector<8x1xf32> -> vector<8x1xf32>
      %c16_119 = arith.constant 16 : index
      %c0_120 = arith.constant 0 : index
      %149 = vector.load %arg10[%c16_119, %c0_120] : memref<32x8xf32, #tpu.memory_space<vmem>>, vector<8x8xf32>
      %150 = vector.broadcast %148 : vector<8x1xf32> to vector<8x8xf32>
      %151 = arith.mulf %149, %150 : vector<8x8xf32>
      %c16_121 = arith.constant 16 : index
      %c0_122 = arith.constant 0 : index
      %152 = vector.load %arg6[%c16_121, %c0_122] : memref<32x32xf32, #tpu.memory_space<vmem>>, vector<8x32xf32>
      %cst_123 = arith.constant dense<0.000000e+00> : vector<8x32xf32>
      %153 = tpu.matmul %151, %152, %cst_123 {dimension_numbers = #tpu.dot_dimension_numbers<[1], [0], [0], [1], [0, 0, 1, 1], [], []>} : vector<8x8xf32>, vector<8x32xf32>, vector<8x32xf32> -> vector<8x32xf32>
      %154 = arith.addf %146, %153 : vector<8x32xf32>
      %c24_124 = arith.constant 24 : index
      %c0_125 = arith.constant 0 : index
      %155 = vector.load %arg9[%c24_124, %c0_125] : memref<32x1xf32, #tpu.memory_space<vmem>>, vector<8x1xf32>
      %156 = tpu.reciprocal %155 {approx = true} : vector<8x1xf32> -> vector<8x1xf32>
      %c24_126 = arith.constant 24 : index
      %c0_127 = arith.constant 0 : index
      %157 = vector.load %arg10[%c24_126, %c0_127] : memref<32x8xf32, #tpu.memory_space<vmem>>, vector<8x8xf32>
      %158 = vector.broadcast %156 : vector<8x1xf32> to vector<8x8xf32>
      %159 = arith.mulf %157, %158 : vector<8x8xf32>
      %c24_128 = arith.constant 24 : index
      %c0_129 = arith.constant 0 : index
      %160 = vector.load %arg6[%c24_128, %c0_129] : memref<32x32xf32, #tpu.memory_space<vmem>>, vector<8x32xf32>
      %cst_130 = arith.constant dense<0.000000e+00> : vector<8x32xf32>
      %161 = tpu.matmul %159, %160, %cst_130 {dimension_numbers = #tpu.dot_dimension_numbers<[1], [0], [0], [1], [0, 0, 1, 1], [], []>} : vector<8x8xf32>, vector<8x32xf32>, vector<8x32xf32> -> vector<8x32xf32>
      %162 = arith.addf %154, %161 : vector<8x32xf32>
      %c0_131 = arith.constant 0 : index
      %c0_132 = arith.constant 0 : index
      %c0_133 = arith.constant 0 : index
      %163 = vector.load %arg7[%c0_131, %c0_132, %c0_133] : memref<1x8x32xf32, #tpu.memory_space<vmem>>, vector<1x8x32xf32>
      %164 = vector.shape_cast %163 : vector<1x8x32xf32> to vector<8x32xf32>
      %165 = vector.shape_cast %162 : vector<8x32xf32> to vector<1x8x32xf32>
      tpu.vector_store %arg7[%c0_131, %c0_132, %c0_133], %165 {strides = array<i32>} : memref<1x8x32xf32, #tpu.memory_space<vmem>>, vector<1x8x32xf32>,
    } else {
    }
    return
  }
  func.func @transform_0(%arg0: i32, %arg1: i32, %arg2: i32) -> (i32, i32, i32) {
    %c0_i32 = arith.constant 0 : i32
    %c0_i32_0 = arith.constant 0 : i32
    return %arg0, %arg1, %c0_i32 : i32, i32, i32
  }
  func.func @transform_1(%arg0: i32, %arg1: i32, %arg2: i32) -> (i32, i32, i32) {
    %c0_i32 = arith.constant 0 : i32
    %c0_i32_0 = arith.constant 0 : i32
    return %arg0, %arg2, %c0_i32 : i32, i32, i32
  }
  func.func @transform_2(%arg0: i32, %arg1: i32, %arg2: i32) -> (i32, i32, i32) {
    %c0_i32 = arith.constant 0 : i32
    %c0_i32_0 = arith.constant 0 : i32
    return %arg0, %arg2, %c0_i32 : i32, i32, i32
  }
  func.func @transform_3(%arg0: i32, %arg1: i32, %arg2: i32) -> (i32, i32) {
    %c0_i32 = arith.constant 0 : i32
    %c0_i32_0 = arith.constant 0 : i32
    %c0_i32_1 = arith.constant 0 : i32
    return %c0_i32, %c0_i32_0 : i32, i32
  }
  func.func @transform_4(%arg0: i32, %arg1: i32, %arg2: i32) -> (i32, i32, i32) {
    %c0_i32 = arith.constant 0 : i32
    %c0_i32_0 = arith.constant 0 : i32
    return %arg0, %arg1, %c0_i32 : i32, i32, i32
  }
}

</mosaic_0001>

<bundles_post_ra>
// kernel: tpu_custom_call.1
= control target key start
LH: loop header
LB: loop body
LE: loop exit
PB: predicated region body
PF: predicated region fallthrough
CT: control target
= control target key end

     0   :  { %s2727_s0 = inlined_call_operand.hbm [shape: f32[2,8,32], index: 0, kind: input, shape index: {}]   ;;  %s2728_s1 = inlined_call_operand.hbm [shape: f32[2,16,32], index: 1, kind: input, shape index: {}]   ;;  %s2729_s2 = inlined_call_operand.hbm [shape: f32[2,16,32], index: 2, kind: input, shape index: {}]   ;;  %s2730_s3 = inlined_call_operand.hbm [shape: f32[32,32], index: 3, kind: input, shape index: {}]   ;;  %s2731_s4 = inlined_call_operand.hbm [shape: f32[2,8,32], index: 4, kind: output, shape index: {}]  }
   0x1   :  { %2751 = sst [smem:[#allocation24_spill]] %s2728_s1 }
   0x2   :  { %9 = vsyncpa [#allocation6], 0 }
   0x3   :  { %11 = vsyncpa [#allocation6 + $0x1], 0 }
   0x4   :  { %12 = vsyncpa [#allocation9], 0 }
   0x5   :  { %14 = vsyncpa [#allocation9 + $0x1], 0 }
   0x6   :  { %15 = vsyncpa [#allocation12], 0 }
   0x7   :  { %16 = vsyncpa [#allocation7], 0 }
   0x8   :  { %18 = vsyncpa [#allocation7 + $0x1], 0  ;;  %s2248_s15 = smov 0   ;;  %s2250_s16 = smov 0  }
   0x9   :  { %s2252_s17 = smov 0   ;;  %s2254_s18 = smov 0  }
   0xa   :  { %s2256_s19 = smov 0   ;;  %s2258_s20 = smov 0  }
   0xb LB: > { %2752 = sst [smem:[#allocation18_spill]] %s2194_s17  ;;  %s43_s21 = sadd.s32 1, %s2202_s19  ;;  %s2206_s20 = sphi %s2258_s20, %s24_s20   ;;  %s2202_s19 = sphi %s2256_s19, %s2785_s19   ;;  %s2198_s18 = sphi %s2254_s18, %s2784_s18   ;;  %s2194_s17 = sphi %s2252_s17, %s2783_s17   ;;  %s2190_s16 = sphi %s2250_s16, %s2787_s16   ;;  %s2186_s15 = sphi %s2248_s15, %s2786_s15  }
   0xc   : > { %2753 = sst [smem:[#allocation19_spill]] %s2202_s19  ;;  %s52_s22 = sadd.s32 1, %s2194_s17 }
   0xd   : > { %2754 = sst [smem:[#allocation20_spill]] %s2206_s20  ;;  %p45_p0 = scmp.ge.s32.totalorder %s43_s21, 2 }
   0xe   : > { %p2732_p1 = scmp.ne.s32.totalorder %s2194_s17, %s2190_s16  ;;  %p60_p2 = scmp.eq.s32.totalorder %s2206_s20, 0 }
   0xf   : > { %s2789_s21 = smov (%p45_p0, %s43_s21), 0  ;;  %p1880_p6 = scmp.lt.s32.totalorder %s2206_s20, 2 }
  0x10   : > { %2755 = sst [smem:[#allocation21_spill]] %s2789_s21  ;;  %p61_p3 = por %p60_p2, %p2732_p1 }
  0x11   : > { %s47_s23 = ssub.s32 %s2202_s19, %s2789_s21  ;;  %s2293_s24 = sand.u32 1, %s2194_s17  }
  0x12   : > { %p50_p5 = scmp.eq.s32.totalorder %s47_s23, 0  ;;  %s226_s25 = sand.u32 1, %s2206_s20  }
  0x13   : > { %p2299_p7 = pnand %p1880_p6, %p61_p3  ;;  %s1669_s28 = sshll.u32 %s2293_s24, 4 }
  0x14   : > { %s2297_s26 = scalar_select %p50_p5, %s2194_s17, %s52_s22  }
  0x15   : > { %s2757_s27 = scalar_select %p2299_p7, 1, 0 }
  0x16   : > { %2756 = sst [smem:[#allocation22_spill]] %s2297_s26  ;;  %s1705_s29 = sshll.u32 %s2202_s19, 8 }
  0x17   : > { %s2758_s1 = sld [smem:[#allocation24_spill]]  ;;  %s230_s7 = scalar_lea.vmem [#allocation8], %s1669_s28 }
  0x18   : > { %s239_s8 = sshll.u32 %s230_s7, 4  ;;  %s2316_s9 = scalar_lea.sflag [#allocation9], %s226_s25  ;;  %s2314_s8 = int_to_ptr.vmem [resolvable:$true] %s239_s8 }
  0x19   : > { %p2322_p9 = pneg %p2299_p7 }
  0x1b   : > { %s2759_s11 = scalar_select %p2322_p9, 1, 0 }
  0x1d   : > { %s2310_s6 = scalar_lea.hbm %s2758_s1, %s1705_s29  ;;  %s2003_s14 = scalar_lea.hbm %s2758_s1, 512 }
  0x1e   : > { %s1998_s10 = scalar_lea.hbm %s2310_s6, 256  ;;  %p2004_p12 = scmp.lt.u32.totalorder %s2310_s6, %s2758_s1 }
  0x1f   : > { %p1999_p8 = scmp.ne.s32.totalorder %s2310_s6, %s1998_s10  ;;  %p2005_p13 = scmp.lt.u32.totalorder %s2003_s14, %s1998_s10 }
  0x20   : > { %p2007_p2 = scmp.lt.u32.totalorder %s1998_s10, %s2310_s6 }
  0x21   : > { %p2001_p10 = pnand %p2322_p9, %p1999_p8  ;;  %p2006_p0 = por %p2005_p13, %p2004_p12 }
  0x23   : > { %p2002_p11 = pneg %p2001_p10  ;;  %p2008_p3 = por %p2007_p2, %p2006_p0 }
  0x25   : > { %p2009_p5 = pnand %p2008_p3, %p2002_p11 }
  0x27   : > { %2012 = shalt.err (!%p2009_p5)
}
  0x28   : > { %s2013_s25 = scalar_lea.vmem %s2314_s8, 256  ;;  %s2208_s30 = smov [#allocation8]  }
  0x29   : > { %p2014_p6 = scmp.ne.s32.totalorder %s2314_s8, %s2013_s25  ;;  %s2018_s5 = sshll.u32 %s2208_s30, 4  ;;  %s2019_s5 = int_to_ptr.vmem [resolvable:$false] %s2018_s5 }
  0x2a   : > { %s2020_s7 = scalar_lea.vmem %s2019_s5, 512  ;;  %p2021_p4 = scmp.lt.s32.totalorder %s2314_s8, %s2019_s5 }
  0x2b   : > { %p2016_p8 = pnand %p2014_p6, %p2322_p9  ;;  %p2022_p1 = scmp.lt.s32.totalorder %s2020_s7, %s2013_s25 }
  0x2d   : > { %p2017_p10 = pneg %p2016_p8  ;;  %p2023_p12 = por %p2022_p1, %p2021_p4 }
  0x2f   : > { %p2024_p13 = pnand %p2023_p12, %p2017_p10 }
  0x31   : > { %2027 = shalt.err (!%p2024_p13)
}
  0x32   : > { %s2733_s10 = smov 128   ;;  %s2735_s12 = smov 8  }
  0x33   : > { %1871 = dma.hbm_to_vmem [thread:$0]  (!%p2299_p7), %s2310_s6, 256, %s2314_s8, %s2316_s9, %s2733_s10, %s2733_s10, %s2735_s12  }
  0x34   : > { %s2354_s22 = scalar_lea.hbm %s2729_s2, %s1705_s29  ;;  %s253_s23 = scalar_lea.vmem [#allocation10], %s1669_s28 }
  0x35   : > { %s262_s25 = sshll.u32 %s253_s23, 4  ;;  %s2359_s30 = sadd.s32 4294967295, %s2206_s20   ;;  %s2389_s25 = int_to_ptr.vmem [resolvable:$true] %s262_s25 }
  0x36   : > { %s1663_s5 = sadd.s32 4294967294, %s2206_s20   ;;  %p65_p1 = scmp.ne.s32.totalorder %s2190_s16, %s2186_s15 }
  0x37   : > { %p2743_p4 = scmp.eq.s32.totalorder %s2359_s30, 0  ;;  %p168_p11 = scmp.eq.s32.totalorder %s2359_s30, 1 }
  0x38   : > { %p174_p0 = scmp.eq.s32.totalorder %s1663_s5, 1  ;;  %p1664_p2 = scmp.ge.s32.totalorder %s2206_s20, 1 }
  0x39   : > { %p2369_p3 = por %p2743_p4, %p65_p1  ;;  %p2761_p5 = scmp.ne.s32.totalorder %s2194_s17, %s2190_s16 }
  0x3a   : > { %p2380_p8 = por %p174_p0, %p65_p1  ;;  %p181_p10 = scmp.lt.s32.totalorder %s2206_s20, 3 }
  0x3b   : > { %s2760_s29 = scalar_select %p2369_p3, 1, 0 }
  0x3c   : > { %p2376_p6 = por %p168_p11, %p2761_p5  ;;  %p2385_p12 = pnand %p1664_p2, %p181_p10 }
  0x3d   : > { %s2763_s6 = scalar_select %p2380_p8, 1, 0 }
  0x3e   : > { %s2762_s28 = scalar_select %p2376_p6, 1, 0 }
  0x3f   : > { %2764 = sst [smem:[#allocation23_spill]] %s2763_s6  ;;  %s2211_s7 = smov [#allocation11]  }
  0x40   : > { %s2765_s8 = scalar_select %p2385_p12, 1, 0 }
  0x41   : > { %s193_s13 = sshll.u32 %s2211_s7, 4  ;;  %p1861_p13 = pneg %p2385_p12  ;;  %s2391_s13 = int_to_ptr.vmem [resolvable:$true] %s193_s13 }
  0x42   : > { %s1667_s14 = sshll.u32 %s2293_s24, 3  ;;  %s1668_s23 = sshll.u32 %s2202_s19, 7 }
  0x43   : > { %p2399_p1 = pnand %p1861_p13, %p2743_p4  ;;  %s2406_s1 = scalar_lea.hbm %s2727_s0, %s1668_s23 }
  0x44   : > { %s211_s7 = scalar_lea.vmem [#allocation5], %s1667_s14  ;;  %s2028_s20 = scalar_lea.hbm %s2730_s3, 512 }
  0x45   : > { %s219_s21 = sshll.u32 %s211_s7, 4  ;;  %p2029_p11 = scmp.ne.s32.totalorder %s2730_s3, %s2028_s20  ;;  %s2408_s21 = int_to_ptr.vmem [resolvable:$true] %s219_s21 }
  0x46   : > { %p2030_p0 = pneg %p2399_p1  ;;  %p2035_p10 = scmp.lt.u32.totalorder %s2028_s20, %s2730_s3 }
  0x48   : > { %p2031_p2 = pnand %p2030_p0, %p2029_p11 }
  0x4a   : > { %p2032_p5 = pneg %p2031_p2 }
  0x4c   : > { %p2037_p13 = pnand %p2035_p10, %p2032_p5 }
  0x4e   : > { %2040 = shalt.err (!%p2037_p13)
}
  0x4f   : > { %s2041_s14 = scalar_lea.vmem %s2391_s13, 512  ;;  %p2049_p3 = scmp.lt.s32.totalorder %s2391_s13, %s2391_s13 }
  0x50   : > { %p2042_p4 = scmp.ne.s32.totalorder %s2391_s13, %s2041_s14  ;;  %p2050_p12 = scmp.lt.s32.totalorder %s2041_s14, %s2041_s14 }
  0x52   : > { %p2044_p8 = pnand %p2042_p4, %p2030_p0  ;;  %p2051_p7 = por %p2050_p12, %p2049_p3 }
  0x54   : > { %p2045_p6 = pneg %p2044_p8 }
  0x56   : > { %p2052_p9 = pnand %p2051_p7, %p2045_p6 }
  0x58   : > { %2055 = shalt.err (!%p2052_p9)
}
  0x59   : > { %s2767_s17 = smov 8   ;;  %s2768_s19 = smov 128  }
  0x5a   : > { %1864 = dma.hbm_to_vmem [thread:$0]  (!%p2399_p1), %s2730_s3, 512, %s2391_s13, [#allocation12], %s2768_s19, %s2768_s19, %s2767_s17  }
  0x5b   : > { %s208_s6 = scalar_lea.sflag [#allocation6], %s2293_s24  ;;  %s2056_s23 = scalar_lea.hbm %s2406_s1, 128 }
  0x5c   : > { %p2057_p7 = scmp.ne.s32.totalorder %s2406_s1, %s2056_s23  ;;  %p2769_p9 = scmp.ne.s32.totalorder %s2759_s11, 0 }
  0x5d   : > { %s2061_s10 = scalar_lea.hbm %s2727_s0, 256  ;;  %p2062_p6 = scmp.lt.u32.totalorder %s2406_s1, %s2727_s0 }
  0x5e   : > { %p2059_p4 = pnand %p2057_p7, %p2769_p9  ;;  %p2063_p8 = scmp.lt.u32.totalorder %s2061_s10, %s2056_s23 }
  0x5f   : > { %p2065_p11 = scmp.lt.u32.totalorder %s2056_s23, %s2406_s1 }
  0x60   : > { %p2060_p3 = pneg %p2059_p4  ;;  %p2064_p12 = por %p2063_p8, %p2062_p6 }
  0x62   : > { %p2066_p0 = por %p2065_p11, %p2064_p12 }
  0x64   : > { %p2067_p2 = pnand %p2066_p0, %p2060_p3 }
  0x66   : > { %2070 = shalt.err (!%p2067_p2)
}
  0x67   : > { %s2071_s24 = scalar_lea.vmem %s2408_s21, 128  ;;  %s2212_s13 = smov [#allocation5]  }
  0x68   : > { %p2072_p1 = scmp.ne.s32.totalorder %s2408_s21, %s2071_s24  ;;  %s2076_s20 = sshll.u32 %s2212_s13, 4  ;;  %s2077_s20 = int_to_ptr.vmem [resolvable:$false] %s2076_s20 }
  0x69   : > { %s2078_s26 = scalar_lea.vmem %s2077_s20, 256  ;;  %p2079_p13 = scmp.lt.s32.totalorder %s2408_s21, %s2077_s20 }
  0x6a   : > { %p2074_p5 = pnand %p2072_p1, %p2769_p9  ;;  %p2080_p7 = scmp.lt.s32.totalorder %s2078_s26, %s2071_s24 }
  0x6c   : > { %p2075_p10 = pneg %p2074_p5  ;;  %p2081_p4 = por %p2080_p7, %p2079_p13 }
  0x6e   : > { %p2082_p6 = pnand %p2081_p4, %p2075_p10 }
  0x70   : > { %2085 = shalt.err (!%p2082_p6)
}
  0x71   : > { %p2770_p3 = scmp.ne.s32.totalorder %s2757_s27, 0  ;;  %s2086_s23 = scalar_lea.hbm %s2354_s22, 256 }
  0x72   : > { %p2087_p8 = scmp.ne.s32.totalorder %s2354_s22, %s2086_s23  ;;  %s2091_s10 = scalar_lea.hbm %s2729_s2, 512 }
  0x73   : > { %1868 = dma.hbm_to_vmem [thread:$0]  (!%p2770_p3), %s2406_s1, 128, %s2408_s21, %s208_s6  }
  0x74   : > { %p2089_p12 = pnand %p2087_p8, %p2769_p9  ;;  %p2092_p0 = scmp.lt.u32.totalorder %s2354_s22, %s2729_s2 }
  0x75   : > { %p2093_p2 = scmp.lt.u32.totalorder %s2091_s10, %s2086_s23  ;;  %p2095_p5 = scmp.lt.u32.totalorder %s2086_s23, %s2354_s22 }
  0x76   : > { %p2090_p11 = pneg %p2089_p12 }
  0x77   : > { %p2094_p1 = por %p2093_p2, %p2092_p0 }
  0x79   : > { %p2096_p10 = por %p2095_p5, %p2094_p1 }
  0x7b   : > { %p2097_p13 = pnand %p2096_p10, %p2090_p11 }
  0x7d   : > { %2100 = shalt.err (!%p2097_p13)
}
  0x7e   : > { %s2101_s1 = scalar_lea.vmem %s2389_s25, 256  ;;  %s2213_s21 = smov [#allocation10]  }
  0x7f   : > { %p2102_p7 = scmp.ne.s32.totalorder %s2389_s25, %s2101_s1  ;;  %s2106_s6 = sshll.u32 %s2213_s21, 4  ;;  %s2107_s6 = int_to_ptr.vmem [resolvable:$false] %s2106_s6 }
  0x80   : > { %s2108_s24 = scalar_lea.vmem %s2107_s6, 512  ;;  %p2109_p8 = scmp.lt.s32.totalorder %s2389_s25, %s2107_s6 }
  0x81   : > { %p2104_p4 = pnand %p2102_p7, %p2769_p9  ;;  %p2110_p12 = scmp.lt.s32.totalorder %s2108_s24, %s2101_s1 }
  0x83   : > { %p2105_p6 = pneg %p2104_p4  ;;  %p2111_p0 = por %p2110_p12, %p2109_p8 }
  0x85   : > { %p2112_p2 = pnand %p2111_p0, %p2105_p6 }
  0x87   : > { %2115 = shalt.err (!%p2112_p2)
}
  0x88   : > { %1874 = dma.hbm_to_vmem [thread:$0]  (!%p2770_p3), %s2354_s22, 256, %s2389_s25, %s2316_s9, %s2768_s19, %s2768_s19, %s2767_s17  }
  0x89   : > { %p2771_p9 = scmp.ne.s32.totalorder %s2765_s8, 0 }
  0x8a   : > { %s2484_s11 = sand.u32 (!%p2771_p9), 1, %s2190_s16   ;;  %p2772_p11 = scmp.ne.s32.totalorder (!%p2771_p9), %s2760_s29, 0 }
  0x8b   : > { %274 = sbr.rel (%p2771_p9) target bundleno = 2709 (0xa95), region = 36  ;;  %s1676_s13 = sshll.u32 (!%p2771_p9), %s2484_s11, 3 }
  0x8c   : > { %s277_s20 = scalar_lea.sflag (!%p2771_p9), [#allocation6], %s2484_s11  ;;  %s280_s27 = scalar_lea.vmem (!%p2771_p9), [#allocation5], %s1676_s13 }
  0x92   : > { %2169 = dma.done.wait (%p2772_p11), %s277_s20, 128  }
  0x93   : > { %2171 = vsyncadd (%p2772_p11), %s277_s20, 4294967168  ;;  %s285_s9 = sand.u32 1, %s2359_s30   ;;  %s1677_s22 = sshll.u32 %s2484_s11, 4 }
  0x94   : > { %s286_s25 = scalar_lea.sflag [#allocation9], %s285_s9  ;;  %s289_s8 = scalar_lea.vmem [#allocation8], %s1677_s22 }
  0x95   : > { %2173 = dma.done.wait (%p2772_p11), %s286_s25, 512  }
  0x96   : > { %2175 = vsyncadd (%p2772_p11), %s286_s25, 4294966784  ;;  %s2500_s17 = scalar_lea.vmem [#allocation10], %s1677_s22  ;;  %p2773_p3 = scmp.eq.s32.totalorder %s2359_s30, 0 }
  0x98   : > { %2177 = dma.done.wait (%p2773_p3), [#allocation12], 512   ;;  %p2774_p1 = pmov %p2773_p3 }
  0x99   : > { %vm352_vm0 = vcmask 64512   ;;  %v2214_v0 = vmov 0.0|0.0   ;;  %vm2215_vm1 = vmmov 0   ;;  %v2216_v1 = vmov 0.0   ;;  %v359_v2 = vld [vmem:[%s289_s8] sm:$0xff]  ;;  %v360_v3 = vld [vmem:[%s289_s8 + $0x8] sm:$0xff] }
  0x9a   : > { %2179 = vsyncadd (%p2774_p1), [#allocation12], 4294966784  ;;  %1815 = vmatprep.subr.bf16.mxu1 %v2214_v0  ;;  %1743 = vmatprep.mubr.msk.f32.mxu1 %vm2215_vm1, %v2216_v1  ;;  %353 = vst.msk [vmem:[#allocation4] sm:$0xff] %vm352_vm0, %v2216_v1  ;;  %v1816_v5 = vpack.c.bf16 %v360_v3, %v359_v2  ;;  %v357_v6 = vld [vmem:[%s280_s27] sm:$0xff]  ;;  %vm343_vm3 = vcmask 7168   ;;  %v2217_v8 = vmov -inf   ;;  %v2548_v13 = vpack.i.bf16 %v360_v3, %v359_v2 }
  0x9b   : > { %354 = vst.msk [vmem:[#allocation4 + $0x8] sm:$0xff] %vm352_vm0, %v2216_v1  ;;  %355 = vst.msk [vmem:[#allocation4 + $0x10] sm:$0xff] %vm352_vm0, %v2216_v1  ;;  %1826 = vmatprep.subr.bf16.mxu0 %v2214_v0  ;;  %1764 = vmatprep.mubr.msk.f32.mxu0 %vm2215_vm1, %v2216_v1  ;;  %v2529_v7 = vmul.f32 0.35355338, %v357_v6  ;;  %vm444_vm4 = vcmask 130048   ;;  %v2218_v12 = vmov 0  }
  0x9c   : > { %356 = vst.msk [vmem:[#allocation4 + $0x18] sm:$0xff] %vm352_vm0, %v2216_v1  ;;  %vm2522_vm2 = vmpackc.low %vm352_vm0, %vm352_vm0  ;;  %1942 = vset.pattern.permute.xlu0 %v2218_v12  ;;  %1948 = vset.pattern.permute.xlu1 %v2218_v12  ;;  %s2219_s30 = smov 120   ;;  %v361_v18 = vld [vmem:[%s2500_s17] sm:$0xff]  ;;  %v362_v19 = vld [vmem:[%s2500_s17 + $0x8] sm:$0xff]  ;;  %s2220_s29 = smov 112   ;;  %vm1503_vm5 = vcmask 261120  }
  0x9d   : > { %1818 = vmatpush3.bf16.xpose.msk.msra.mxu1 %vm2522_vm2, %v1816_v5  ;;  %344 = vst.msk [vmem:[#allocation2] sm:$0xff] %vm343_vm3, %v2217_v8  ;;  %345 = vst.msk [vmem:[#allocation2 + $0x8] sm:$0xff] %vm343_vm3, %v2217_v8  ;;  %1944 = vrot.lane.b32.xlu1 %v2548_v13, %s2219_s30  ;;  %v1820_v20 = vpack.c.bf16 %v362_v19, %v361_v18  ;;  %v2582_v35 = vpack.i.bf16 %v362_v19, %v361_v18  ;;  %s2221_s19 = smov 104   ;;  %s1702_s26 = sshll.u32 %s2198_s18, 7 }
  0x9e   : > { %1819 = vmatprep.subr.bf16.mxu1 %v2214_v0  ;;  %346 = vst.msk [vmem:[#allocation2 + $0x10] sm:$0xff] %vm343_vm3, %v2217_v8  ;;  %347 = vst.msk [vmem:[#allocation2 + $0x18] sm:$0xff] %vm343_vm3, %v2217_v8  ;;  %s336_s23 = scalar_lea.vmem [#allocation13], %s1676_s13  ;;  %s2678_s12 = scalar_lea.hbm %s2731_s4, %s1702_s26 }
  0x9f   : > { %348 = vst.msk [vmem:[#allocation3] sm:$0xff] %vm343_vm3, %v2216_v1  ;;  %349 = vst.msk [vmem:[#allocation3 + $0x8] sm:$0xff] %vm343_vm3, %v2216_v1  ;;  %s1520_s5 = sshll.u32 %s336_s23, 4  ;;  %s1506_s14 = scalar_lea.sflag [#allocation7], %s2484_s11  ;;  %s2680_s5 = int_to_ptr.vmem [resolvable:$true] %s1520_s5 }
  0xa0   : > { %350 = vst.msk [vmem:[#allocation3 + $0x10] sm:$0xff] %vm343_vm3, %v2216_v1  ;;  %351 = vst.msk [vmem:[#allocation3 + $0x18] sm:$0xff] %vm343_vm3, %v2216_v1  ;;  %s2116_s1 = scalar_lea.vmem %s2680_s5, 128  ;;  %p2777_p10 = scmp.ne.s32.totalorder %s2762_s28, 0 }
  0xa1   : > { %558 = vrot.lane.b32.xlu1 %v2529_v7, %s2219_s30  ;;  %p2117_p5 = scmp.ne.s32.totalorder %s2680_s5, %s2116_s1  ;;  %s2222_s18 = smov [#allocation13]  }
  0xa2   : > { %s2120_s21 = sshll.u32 %s2222_s18, 4  ;;  %s2121_s21 = int_to_ptr.vmem [resolvable:$false] %s2120_s21 }
  0xa3   : > { %p2118_p13 = pnand %p2117_p5, %p2777_p10  ;;  %s2122_s6 = scalar_lea.vmem %s2121_s21, 256 }
  0xa4   : > { %1744 = vmatmul.mubr.msk.f32.vlgmr.msra.gmra.mrb[0].mxu1 %vm352_vm0, %v2529_v7  ;;  %v2554_v14 = vld [vmem:[#allocation2] sm:$0xff]  ;;  %v2590_v36 = vld [vmem:[#allocation2 + $0x8] sm:$0xff]  ;;  %p2123_p4 = scmp.lt.s32.totalorder %s2680_s5, %s2121_s21  ;;  %p2124_p6 = scmp.lt.s32.totalorder %s2122_s6, %s2116_s1 }
  0xa5   : > { %1750 = vmatprep.mubr.msk.f32.mxu1 %vm2215_vm1, %v2216_v1  ;;  %1821 = vmatpush3.bf16.msra.mxu1 %v1820_v20  ;;  %v847_v58 = vld [vmem:[#allocation2 + $0x10] sm:$0xff]  ;;  %p2119_p7 = pneg %p2118_p13 }
  0xa6   : > { %1822 = vmatprep.subr.bf16.mxu1 %v2214_v0  ;;  %p2125_p8 = por %p2124_p6, %p2123_p4 }
  0xa8   : > { %p2126_p12 = pnand %p2125_p8, %p2119_p7 }
 0x10f   : > { %v1945_v24 = vpop.permute.xlu1 %1944 }
 0x110   : > { %v1947_v25 = vunpack.i.h.bf16 %v1945_v24  ;;  %v1946_v26 = vunpack.i.l.bf16 %v1945_v24  ;;  %v1052_v24 = vld [vmem:[#allocation2 + $0x18] sm:$0xff] }
 0x112   : > { %v1823_v27 = vpack.c.bf16 %v1947_v25, %v1946_v26 }
 0x113   : > { %v559_v29 = vpop.permute.xlu1 %558 }
 0x177   : > { %v439_v9 = vpop.f32.mrb[0].mxu1 }
 0x178   : > { %v1745_v10 = vpop.f32.mrb[1].mxu1  ;;  %v445_v11 = vsel %vm444_vm4, %v439_v9, -inf }
 0x179   : > { %446 = vmax.xlane.f32.xlu0 %v445_v11 }
 0x206   : > { %v447_v15 = vpop.xlane.xlu0 %446 }
 0x207   : > { %v2557_v16 = vmax.f32 %v2554_v14, %v447_v15 }
 0x209   : > { %v449_v17 = vsub.f32 %v2554_v14, %v2557_v16  ;;  %550 = vst.msk [vmem:[#allocation2] sm:$0xff] %vm343_vm3, %v2557_v16  ;;  %454 = vperm.xlu0 %1942, %v2557_v16   ;;  %v870_v14 = vld [vmem:[#allocation4 + $0x10] sm:$0xff] }
 0x20d   : > { %1950 = vrot.lane.b32.xlu0 %v2582_v35, %s2219_s30 }
 0x211   : > { %1955 = vrot.lane.b32.xlu0 %v2548_v13, %s2220_s29 }
 0x215   : > { %763 = vrot.lane.b32.xlu0 %v2529_v7, %s2220_s29 }
 0x288   : > { %v455_v21 = vpop.permute.xlu0 %454 }
 0x289   : > { %v457_v22 = vsub.f32 %v439_v9, %v455_v21 }
 0x28b   : > { %v458_v23 = vmul.f32 1.442695, %v457_v22 }
 0x28c   : > { %v1951_v40 = vpop.permute.xlu0 %1950 }
 0x28d   : > { %1974 = vpow2.f32 %v458_v23  ;;  %v1953_v41 = vunpack.i.h.bf16 %v1951_v40  ;;  %v1952_v42 = vunpack.i.l.bf16 %v1951_v40 }
 0x28f   : > { %v1827_v43 = vpack.c.bf16 %v1953_v41, %v1952_v42 }
 0x290   : > { %v1956_v47 = vpop.permute.xlu0 %1955 }
 0x291   : > { %1828 = vmatpush3.bf16.msra.mxu0 %v1827_v43  ;;  %v1958_v48 = vunpack.i.h.bf16 %v1956_v47  ;;  %v1957_v49 = vunpack.i.l.bf16 %v1956_v47 }
 0x292   : > { %1829 = vmatprep.subr.bf16.mxu0 %v2214_v0 }
 0x293   : > { %v1830_v50 = vpack.c.bf16 %v1958_v48, %v1957_v49 }
 0x294   : > { %v764_v52 = vpop.permute.xlu0 %763 }
 0x297   : > { %v2567_v28 = vpop.eup %1974 }
 0x298   : > { %1751 = vmatmul.mubr.msk.f32.vlgmr.msra.gmra.mrb[2].mxu1 %vm444_vm4, %v2567_v28  ;;  %v462_v41 = vsel %vm444_vm4, %v2567_v28, 0.0  ;;  %v450_v28 = vmul.f32 1.442695, %v449_v17 }
 0x299   : > { %1825 = vmatpush3.bf16.xpose.msk.msra.mxu1 %vm2522_vm2, %v1823_v27  ;;  %1757 = vmatprep.mubr.msk.f32.mxu1 %vm2215_vm1, %v2216_v1  ;;  %v658_v27 = vld [vmem:[#allocation3 + $0x8] sm:$0xff] }
 0x29a   : > { %1833 = vmatprep.subr.bf16.mxu1 %v2214_v0 }
 0x2a0   : > { %1758 = vmatmul.mubr.msk.f32.vlgmr.msra.gmra.mrb[4].mxu1 %vm352_vm0, %v559_v29 }
 0x2a1   : > { %1778 = vmatprep.mubr.msk.f32.mxu1 %vm2215_vm1, %v2216_v1 }
 0x36b   : > { %v2579_v30 = vpop.f32.mrb[2].mxu1 }
 0x36c   : > { %v1752_v31 = vpop.f32.mrb[3].mxu1 }
 0x373   : > { %v638_v32 = vpop.f32.mrb[4].mxu1 }
 0x374   : > { %v1759_v33 = vpop.f32.mrb[5].mxu1  ;;  %v643_v34 = vsel %vm444_vm4, %v638_v32, -inf }
 0x375   : > { %644 = vmax.xlane.f32.xlu1 %v643_v34 }
 0x402   : > { %v645_v37 = vpop.xlane.xlu1 %644 }
 0x403   : > { %v2593_v38 = vmax.f32 %v2590_v36, %v645_v37  ;;  %v863_v37 = vld [vmem:[#allocation3 + $0x10] sm:$0xff] }
 0x405   : > { %v647_v39 = vsub.f32 %v2590_v36, %v2593_v38  ;;  %755 = vst.msk [vmem:[#allocation2 + $0x8] sm:$0xff] %vm343_vm3, %v2593_v38  ;;  %652 = vperm.xlu1 %1948, %v2593_v38  }
 0x407   : > { %v648_v4 = vmul.f32 1.442695, %v647_v39 }
 0x484   : > { %v653_v44 = vpop.permute.xlu1 %652 }
 0x485   : > { %v655_v45 = vsub.f32 %v638_v32, %v653_v44 }
 0x487   : > { %v656_v46 = vmul.f32 1.442695, %v655_v45 }
 0x489   : > { %1976 = vpow2.f32 %v656_v46 }
 0x493   : > { %v1977_v51 = vpop.eup %1976 }
 0x494   : > { %1765 = vmatmul.mubr.msk.f32.vlgmr.msra.gmra.mrb[0].mxu0 %vm444_vm4, %v1977_v51  ;;  %v660_v21 = vsel %vm444_vm4, %v1977_v51, 0.0 }
 0x495   : > { %1832 = vmatpush3.bf16.xpose.msk.msra.mxu0 %vm2522_vm2, %v1830_v50  ;;  %1771 = vmatprep.mubr.msk.f32.mxu0 %vm2215_vm1, %v2216_v1 }
 0x496   : > { %1840 = vmatprep.subr.bf16.mxu0 %v2214_v0 }
 0x49c   : > { %1772 = vmatmul.mubr.msk.f32.vlgmr.msra.gmra.mrb[2].mxu0 %vm352_vm0, %v764_v52 }
 0x49d   : > { %1792 = vmatprep.mubr.msk.f32.mxu0 %vm2215_vm1, %v2216_v1 }
 0x567   : > { %v2610_v53 = vpop.f32.mrb[0].mxu0 }
 0x568   : > { %v1766_v54 = vpop.f32.mrb[1].mxu0 }
 0x569   : > { %v460_v54 = vld [vmem:[#allocation3] sm:$0xff] }
 0x56f   : > { %v843_v55 = vpop.f32.mrb[2].mxu0 }
 0x570   : > { %v1773_v56 = vpop.f32.mrb[3].mxu0  ;;  %v848_v57 = vsel %vm444_vm4, %v843_v55, -inf }
 0x571   : > { %849 = vmax.xlane.f32.xlu0 %v848_v57 }
 0x5fe   : > { %v850_v59 = vpop.xlane.xlu0 %849 }
 0x5ff   : > { %v851_v60 = vmax.f32 %v847_v58, %v850_v59 }
 0x601   : > { %v852_v61 = vsub.f32 %v847_v58, %v851_v60  ;;  %960 = vst.msk [vmem:[#allocation2 + $0x10] sm:$0xff] %vm343_vm3, %v851_v60  ;;  %857 = vperm.xlu1 %1948, %v851_v60  }
 0x603   : > { %v853_v23 = vmul.f32 1.442695, %v852_v61 }
 0x605   : > { %1960 = vrot.lane.b32.xlu1 %v2582_v35, %s2220_s29 }
 0x609   : > { %1965 = vrot.lane.b32.xlu1 %v2548_v13, %s2221_s19 }
 0x60d   : > { %968 = vrot.lane.b32.xlu1 %v2529_v7, %s2221_s19 }
 0x680   : > { %v858_v62 = vpop.permute.xlu1 %857 }
 0x681   : > { %v860_v63 = vsub.f32 %v843_v55, %v858_v62  ;;  %v1188_v55 = vld [vmem:[#allocation11 + $0x8] sm:$0xff] }
 0x683   : > { %v861_v2 = vmul.f32 1.442695, %v860_v63 }
 0x684   : > { %v1961_v3 = vpop.permute.xlu1 %1960 }
 0x685   : > { %1978 = vpow2.f32 %v861_v2  ;;  %v1963_v5 = vunpack.i.h.bf16 %v1961_v3  ;;  %v1962_v6 = vunpack.i.l.bf16 %v1961_v3 }
 0x686   : > { %1980 = vpow2.f32 %v648_v4  ;;  %v1178_v4 = vld [vmem:[#allocation11] sm:$0xff] }
 0x687   : > { %v1834_v8 = vpack.c.bf16 %v1963_v5, %v1962_v6  ;;  %1982 = vpow2.f32 %v853_v23  ;;  %v1068_v5 = vld [vmem:[#allocation3 + $0x18] sm:$0xff] }
 0x688   : > { %v1966_v9 = vpop.permute.xlu1 %1965 }
 0x689   : > { %1835 = vmatpush3.bf16.msra.mxu1 %v1834_v8  ;;  %v1968_v10 = vunpack.i.h.bf16 %v1966_v9  ;;  %v1967_v11 = vunpack.i.l.bf16 %v1966_v9 }
 0x68a   : > { %1836 = vmatprep.subr.bf16.mxu1 %v2214_v0 }
 0x68b   : > { %v1837_v12 = vpack.c.bf16 %v1968_v10, %v1967_v11  ;;  %v665_v10 = vld [vmem:[#allocation4 + $0x8] sm:$0xff] }
 0x68c   : > { %v969_v7 = vpop.permute.xlu1 %968 }
 0x68f   : > { %v1979_v15 = vpop.eup %1978 }
 0x690   : > { %1779 = vmatmul.mubr.msk.f32.vlgmr.msra.gmra.mrb[6].mxu1 %vm444_vm4, %v1979_v15  ;;  %v865_v22 = vsel %vm444_vm4, %v1979_v15, 0.0  ;;  %v1981_v25 = vpop.eup %1980  ;;  %v468_v15 = vld [vmem:[#allocation4] sm:$0xff] }
 0x691   : > { %1785 = vmatprep.mubr.msk.f32.mxu1 %vm2215_vm1, %v2216_v1  ;;  %v659_v32 = vmul.f32 %v1981_v25, %v658_v27  ;;  %v1983_v33 = vpop.eup %1982 }
 0x692   : > { %1839 = vmatpush3.bf16.xpose.msk.msra.mxu1 %vm2522_vm2, %v1837_v12  ;;  %v864_v36 = vmul.f32 %v1983_v33, %v863_v37 }
 0x699   : > { %1786 = vmatmul.mubr.msk.f32.vlgmr.msra.gmra.mrb[8].mxu1 %vm352_vm0, %v969_v7 }
 0x763   : > { %v2627_v13 = vpop.f32.mrb[6].mxu1 }
 0x764   : > { %v1780_v18 = vpop.f32.mrb[7].mxu1 }
 0x76c   : > { %v1048_v19 = vpop.f32.mrb[8].mxu1 }
 0x76d   : > { %v1787_v20 = vpop.f32.mrb[9].mxu1  ;;  %v1053_v0 = vsel %vm444_vm4, %v1048_v19, -inf }
 0x76e   : > { %1054 = vmax.xlane.f32.xlu1 %v1053_v0 }
 0x772   : > { %661 = vadd.xlane.f32.xlu1 %v660_v21 }
 0x776   : > { %866 = vadd.xlane.f32.xlu1 %v865_v22 }
 0x7fb   : > { %v1055_v26 = vpop.xlane.xlu1 %1054 }
 0x7fc   : > { %v1056_v29 = vmax.f32 %v1052_v24, %v1055_v26 }
 0x7fe   : > { %v1057_v31 = vsub.f32 %v1052_v24, %v1056_v29  ;;  %1165 = vst.msk [vmem:[#allocation2 + $0x18] sm:$0xff] %vm343_vm3, %v1056_v29  ;;  %1062 = vperm.xlu0 %1942, %v1056_v29  }
 0x7ff   : > { %v662_v34 = vpop.xlane.xlu1 %661 }
 0x800   : > { %v663_v40 = vadd.f32 %v662_v34, %v659_v32  ;;  %v1058_v60 = vmul.f32 1.442695, %v1057_v31  ;;  %v1428_v32 = vld [vmem:[#allocation11 + $0x18] sm:$0xff] }
 0x802   : > { %664 = vst.msk [vmem:[#allocation3 + $0x8] sm:$0xff] %vm343_vm3, %v663_v40  ;;  %1970 = vrot.lane.b32.xlu0 %v2582_v35, %s2221_s19 }
 0x803   : > { %v867_v38 = vpop.xlane.xlu1 %866 }
 0x804   : > { %v868_v39 = vadd.f32 %v867_v38, %v864_v36 }
 0x806   : > { %869 = vst.msk [vmem:[#allocation3 + $0x10] sm:$0xff] %vm343_vm3, %v868_v39 }
 0x809   : > { %v1179_v50 = vld [vmem:[#allocation3 + $0x8] sm:$0xff] }
 0x80d   : > { %v1335_v62 = vld [vmem:[#allocation3 + $0x10] sm:$0xff] }
 0x821   : > { %463 = vadd.xlane.f32.xlu0 %v462_v41 }
 0x837   : > { %873 = vperm.xlu0 %1942, %v1983_v33   ;;  %v1075_v33 = vld [vmem:[#allocation4 + $0x18] sm:$0xff] }
 0x87d   : > { %v1063_v42 = vpop.permute.xlu0 %1062 }
 0x87e   : > { %v1065_v43 = vsub.f32 %v1048_v19, %v1063_v42 }
 0x880   : > { %v1066_v44 = vmul.f32 1.442695, %v1065_v43 }
 0x881   : > { %v1971_v45 = vpop.permute.xlu0 %1970 }
 0x882   : > { %1984 = vpow2.f32 %v1066_v44  ;;  %v1973_v46 = vunpack.i.h.bf16 %v1971_v45  ;;  %v1972_v47 = vunpack.i.l.bf16 %v1971_v45 }
 0x883   : > { %1986 = vpow2.f32 %v450_v28 }
 0x884   : > { %v1841_v48 = vpack.c.bf16 %v1973_v46, %v1972_v47  ;;  %1988 = vrcp.f32 %v1179_v50 }
 0x886   : > { %1842 = vmatpush3.bf16.msra.mxu0 %v1841_v48 }
 0x887   : > { %1795 = vmatprep.subr.mxu0 %v2216_v1 }
 0x88c   : > { %v1985_v35 = vpop.eup %1984 }
 0x88d   : > { %1793 = vmatmul.mubr.msk.f32.vlgmr.msra.gmra.mrb[4].mxu0 %vm444_vm4, %v1985_v35  ;;  %v1070_v49 = vsel %vm444_vm4, %v1985_v35, 0.0  ;;  %v1987_v51 = vpop.eup %1986 }
 0x88e   : > { %1071 = vadd.xlane.f32.xlu1 %v1070_v49  ;;  %1797 = vmatprep.mubr.msk.f32.mxu0 %vm2215_vm1, %v2216_v1  ;;  %v1989_v52 = vpop.eup %1988  ;;  %v461_v56 = vmul.f32 %v1987_v51, %v460_v54 }
 0x88f   : > { %1796 = vmatpush3.msra.mxu0 %v1188_v55 }
 0x890   : > { %1800 = vmatprep.subr.mxu0 %v2216_v1 }
 0x89f   : > { %668 = vperm.xlu1 %1948, %v1981_v25   ;;  %v1344_v25 = vld [vmem:[#allocation11 + $0x10] sm:$0xff] }
 0x8a3   : > { %471 = vperm.xlu1 %1948, %v1987_v51  }
 0x8a7   : > { %1184 = vperm.xlu1 %1948, %v1989_v52  }
 0x8ae   : > { %v464_v57 = vpop.xlane.xlu0 %463 }
 0x8af   : > { %v465_v58 = vadd.f32 %v464_v57, %v461_v56 }
 0x8b1   : > { %467 = vst.msk [vmem:[#allocation3] sm:$0xff] %vm343_vm3, %v465_v58 }
 0x8b6   : > { %v874_v16 = vpop.permute.xlu0 %873 }
 0x8b7   : > { %v876_v17 = vmul.f32 %v874_v16, %v870_v14 }
 0x8b8   : > { %v1169_v59 = vld [vmem:[#allocation3] sm:$0xff] }
 0x8b9   : > { %v958_v61 = vadd.f32 %v2627_v13, %v876_v17  ;;  %1990 = vrcp.f32 %v1169_v59 }
 0x8ba   : > { %1992 = vpow2.f32 %v1058_v60 }
 0x8bb   : > { %959 = vst.msk [vmem:[#allocation4 + $0x10] sm:$0xff] %vm352_vm0, %v958_v61  ;;  %1994 = vrcp.f32 %v1335_v62 }
 0x8c2   : > { %v1337_v27 = vld [vmem:[#allocation4 + $0x10] sm:$0xff] }
 0x8c3   : > { %v1991_v63 = vpop.eup %1990 }
 0x8c4   : > { %1174 = vperm.xlu1 %1948, %v1991_v63   ;;  %v1993_v2 = vpop.eup %1992 }
 0x8c5   : > { %v1995_v3 = vpop.eup %1994  ;;  %v1069_v6 = vmul.f32 %v1993_v2, %v1068_v5 }
 0x8c8   : > { %1078 = vperm.xlu1 %1948, %v1993_v2  }
 0x8cc   : > { %1340 = vperm.xlu1 %1948, %v1995_v3  }
 0x91b   : > { %v1072_v8 = vpop.xlane.xlu1 %1071 }
 0x91c   : > { %v1073_v9 = vadd.f32 %v1072_v8, %v1069_v6 }
 0x91e   : > { %1074 = vst.msk [vmem:[#allocation3 + $0x18] sm:$0xff] %vm343_vm3, %v1073_v9 }
 0x91f   : > { %v669_v11 = vpop.permute.xlu1 %668 }
 0x920   : > { %v671_v12 = vmul.f32 %v669_v11, %v665_v10 }
 0x922   : > { %v753_v7 = vadd.f32 %v2610_v53, %v671_v12 }
 0x923   : > { %v472_v13 = vpop.permute.xlu1 %471 }
 0x924   : > { %754 = vst.msk [vmem:[#allocation4 + $0x8] sm:$0xff] %vm352_vm0, %v753_v7  ;;  %v474_v18 = vmul.f32 %v472_v13, %v468_v15 }
 0x925   : > { %v1419_v19 = vld [vmem:[#allocation3 + $0x18] sm:$0xff] }
 0x926   : > { %v548_v20 = vadd.f32 %v2579_v30, %v474_v18  ;;  %1996 = vrcp.f32 %v1419_v19 }
 0x927   : > { %v1185_v21 = vpop.permute.xlu1 %1184 }
 0x928   : > { %549 = vst.msk [vmem:[#allocation4] sm:$0xff] %vm352_vm0, %v548_v20 }
 0x92b   : > { %v1181_v0 = vld [vmem:[#allocation4 + $0x8] sm:$0xff] }
 0x92c   : > { %v1187_v22 = vmul.f32 %v1185_v21, %v1181_v0 }
 0x92e   : > { %1798 = vmatmul.mubr.msk.f32.vlgmr.msra.gmra.mrb[6].mxu0 %vm352_vm0, %v1187_v22 }
 0x92f   : > { %1801 = vmatpush3.msra.mxu0 %v1178_v4  ;;  %1802 = vmatprep.mubr.msk.f32.mxu0 %vm2215_vm1, %v2216_v1  ;;  %v1171_v23 = vld [vmem:[#allocation4] sm:$0xff] }
 0x930   : > { %v1997_v53 = vpop.eup %1996  ;;  %1805 = vmatprep.subr.mxu0 %v2216_v1 }
 0x931   : > { %1424 = vperm.xlu1 %1948, %v1997_v53  }
 0x943   : > { %v1175_v24 = vpop.permute.xlu1 %1174 }
 0x944   : > { %v1177_v30 = vmul.f32 %v1175_v24, %v1171_v23 }
 0x946   : > { %1803 = vmatmul.mubr.msk.f32.vlgmr.msra.gmra.mrb[6].mxu0 %vm352_vm0, %v1177_v30 }
 0x947   : > { %v1079_v26 = vpop.permute.xlu1 %1078  ;;  %1806 = vmatpush3.msra.mxu0 %v1344_v25  ;;  %1807 = vmatprep.mubr.msk.f32.mxu0 %vm2215_vm1, %v2216_v1 }
 0x948   : > { %1810 = vmatprep.subr.mxu0 %v2216_v1  ;;  %v1081_v34 = vmul.f32 %v1079_v26, %v1075_v33 }
 0x94b   : > { %v1341_v29 = vpop.permute.xlu1 %1340 }
 0x94c   : > { %v1343_v31 = vmul.f32 %v1341_v29, %v1337_v27 }
 0x94e   : > { %1808 = vmatmul.mubr.msk.f32.vlgmr.msra.gmra.mrb[6].mxu0 %vm352_vm0, %v1343_v31 }
 0x94f   : > { %1811 = vmatpush3.msra.mxu0 %v1428_v32  ;;  %1812 = vmatprep.mubr.msk.f32.mxu0 %vm2215_vm1, %v2216_v1 }
 0x960   : > { %v1159_v37 = vpop.f32.mrb[4].mxu0 }
 0x961   : > { %v1163_v40 = vadd.f32 %v1159_v37, %v1081_v34  ;;  %v1794_v36 = vpop.f32.mrb[5].mxu0 }
 0x963   : > { %1164 = vst.msk [vmem:[#allocation4 + $0x18] sm:$0xff] %vm352_vm0, %v1163_v40 }
 0x96a   : > { %v1421_v38 = vld [vmem:[#allocation4 + $0x18] sm:$0xff] }
 0x9b0   : > { %v1425_v39 = vpop.permute.xlu1 %1424 }
 0x9b1   : > { %v1427_v41 = vmul.f32 %v1425_v39, %v1421_v38 }
 0x9b3   : > { %1813 = vmatmul.mubr.msk.f32.vlgmr.msra.gmra.mrb[6].mxu0 %vm352_vm0, %v1427_v41 }
 0xa86   : > { %v1498_v1 = vpop.f32.mrb[6].mxu0 }
 0xa87   : > { %1504 = vst.msk [vmem:[%s336_s23] sm:$0xff] %vm1503_vm5, %v1498_v1  ;;  %v1814_v42 = vpop.f32.mrb[7].mxu0 }
 0xa88   : > { %2129 = shalt.err (!%p2126_p12)
}
 0xa89   : > { %s2130_s24 = scalar_lea.hbm %s2678_s12, 128  ;;  %s2134_s20 = scalar_lea.hbm %s2731_s4, 256 }
 0xa8a   : > { %p2131_p0 = scmp.ne.s32.totalorder %s2678_s12, %s2130_s24  ;;  %p2135_p11 = scmp.lt.u32.totalorder %s2678_s12, %s2731_s4 }
 0xa8b   : > { %p2136_p3 = scmp.lt.u32.totalorder %s2134_s20, %s2130_s24  ;;  %p2138_p5 = scmp.lt.u32.totalorder %s2130_s24, %s2678_s12 }
 0xa8c   : > { %p2132_p2 = pnand %p2131_p0, %p2777_p10 }
 0xa8d   : > { %p2137_p1 = por %p2136_p3, %p2135_p11 }
 0xa8e   : > { %p2133_p9 = pneg %p2132_p2 }
 0xa8f   : > { %p2139_p13 = por %p2138_p5, %p2137_p1 }
 0xa91   : > { %p2140_p7 = pnand %p2139_p13, %p2133_p9 }
 0xa93   : > { %2143 = shalt.err (!%p2140_p7)
}
 0xa94   : > { %1859 = dma.vmem_to_hbm [thread:$0]  (%p2777_p10), %s2680_s5, 128, %s2678_s12, %s1506_s14  }
 0xa95 PF: > { %s2778_s22 = sld [smem:[#allocation23_spill]]  ;;  %s2779_s25 = sld [smem:[#allocation20_spill]] }
 0xa96   : > { %s1532_s8 = sand.u32 1, %s2186_s15  }
 0xa97   : > { %s1533_s17 = scalar_lea.sflag [#allocation7], %s1532_s8 }
 0xa9b   : > { %p2780_p4 = scmp.ne.s32.totalorder %s2778_s22, 0  ;;  %p2781_p6 = scmp.ge.s32.totalorder %s2779_s25, 2 }
 0xa9d   : > { %p1876_p8 = pnand %p2781_p6, %p2780_p4 }
 0xa9f   : > { %2181 = dma.done.wait (!%p1876_p8), %s1533_s17, 128  }
 0xaa0   : > { %2183 = vsyncadd (!%p1876_p8), %s1533_s17, 4294967168  ;;  %s24_s20 = sadd.s32 1, %s2779_s25   ;;  %s2782_s30 = sld [smem:[#allocation18_spill]] }
 0xaa1   : > { %p21_p12 = scmp.ge.s32.totalorder %s24_s20, 4   ;;  %s2783_s17 = sld [smem:[#allocation22_spill]] }
 0xaa2   : > { %s2784_s18 = sld [smem:[#allocation19_spill]]  ;;  %s2785_s19 = sld [smem:[#allocation21_spill]] }
 0xaa3   : > { %s2786_s15 = smov %s2190_s16  ;;  %23 = sbr.rel (!%p21_p12) target bundleno = 11 (0xb), region = 117 }
 0xaa6   : > { %s2787_s16 = smov %s2782_s30 }
 0xaaa   :  { %1538 = vsyncpa [#allocation6], 1 }
 0xaab   :  { %1540 = vsyncpa [#allocation6 + $0x1], 1 }
 0xaac   :  { %1541 = vsyncpa [#allocation9], 1 }
 0xaad   :  { %1543 = vsyncpa [#allocation9 + $0x1], 1 }
 0xaae   :  { %1544 = vsyncpa [#allocation12], 1 }
 0xaaf   :  { %1545 = vsyncpa [#allocation7], 1 }
 0xab0   :  { %1547 = vsyncpa [#allocation7 + $0x1], 1 }

</bundles_post_ra>
